<compile_context>
chip_gen: v5e
topology: v5e:2x2
jax: 0.10.0
libtpu: 0.0.40
codegen_flags: <defaults>
</compile_context>

<pallas_src>
import functools

import numpy as np
import jax
import jax.numpy as jnp
from jax.experimental import pallas as pl
from jax.experimental.pallas import tpu as pltpu


def _ctrgc_kernel(x_ref, w1_ref, w2_ref, e1_ref, e2_ref, db_ref, w4_ref, ab_ref,
                  out_ref, *, nb):
    # x_ref  : (NB, K, V)  VMEM   K = C*T (contraction dim on sublanes)
    # w1_ref : (R, K)      VMEM   conv1 weight with temporal mean folded in
    # w2_ref : (R, K)      VMEM   conv2 weight with temporal mean folded in
    # e1_ref : (V, P)      VMEM   P = V*V ; e1[v, v*V + w] = 1   (row broadcast)
    # e2_ref : (V, P)      VMEM   e2[w, v*V + w] = 1             (col broadcast)
    # db_ref : (R, 1)      VMEM   b1 - b2
    # w4_ref : (O, R)      VMEM   alpha * conv4 weight
    # ab_ref : (O, P)      VMEM   alpha * b4 + A (lane-flattened additive epilogue)
    # out_ref: (NB, O, P)  VMEM
    w1 = w1_ref[...]
    w2 = w2_ref[...]
    e1 = e1_ref[...]
    e2 = e2_ref[...]
    db = db_ref[...]
    w4 = w4_ref[...]
    ab = ab_ref[...]

    for i in range(nb):                       # static unroll over samples in the block
        x_n = x_ref[i]                        # (K, V)
        # fused (1x1 conv + temporal mean): x1[r, v] = sum_k w_rep[r, k] * x[k, v]
        x1 = jnp.dot(w1, x_n, preferred_element_type=jnp.float32)       # (R, V)
        x2 = jnp.dot(w2, x_n, preferred_element_type=jnp.float32)       # (R, V)
        # lane-flattened pairwise difference: diff[r, v*V + w] = x1[r, v] - x2[r, w]
        diff = (jnp.dot(x1, e1, preferred_element_type=jnp.float32)
                - jnp.dot(x2, e2, preferred_element_type=jnp.float32)
                + db)                                                    # (R, P)
        t = jnp.tanh(diff)                                               # EUP, full vregs
        # conv4 (alpha pre-folded) + (alpha*b4 + A) epilogue, lane-dense store
        y = jnp.dot(w4, t, preferred_element_type=jnp.float32) + ab      # (O, P)
        out_ref[i] = y.astype(out_ref.dtype)


def _pick_block_n(n, cap=16):
    """Largest divisor of n that keeps >=2 grid steps (megacore) and <= cap samples."""
    if n <= 1:
        return 1
    target = min(cap, max(1, n // 2))
    for nb in range(target, 0, -1):
        if n % nb == 0:
            return nb
    return 1


def ctrgc_forward(x, params, A=None, alpha=1.0, block_n=None):
    """x: (N, C_in, T, V) float32, A: (V, V) or None. Returns (N, C_out, V, V)."""
    N, C, T, V = x.shape
    w1, b1 = params["w1"], params["b1"]
    w2, b2 = params["w2"], params["b2"]
    w4, b4 = params["w4"], params["b4"]
    R = w1.shape[0]
    O = w4.shape[0]
    K = C * T
    P = V * V

    # native-order, contiguous (free) reshape -- no HBM transpose of x
    x_flat = jnp.reshape(x, (N, K, V)).astype(jnp.float32)

    # fold the temporal mean into the conv weights:  k = c*T + t  ->  w[r, c] / T
    w1_rep = jnp.repeat(w1.astype(jnp.float32), T, axis=1) / T           # (R, K)
    w2_rep = jnp.repeat(w2.astype(jnp.float32), T, axis=1) / T           # (R, K)
    db = (b1 - b2).astype(jnp.float32).reshape(R, 1)

    # fold alpha into conv4, and (alpha*b4 + A) into one lane-flattened constant
    w4_m = w4.astype(jnp.float32) * alpha                                # (O, R)
    ab = jnp.broadcast_to(b4.astype(jnp.float32).reshape(O, 1) * alpha, (O, P))
    if A is not None:
        ab = ab + A.astype(jnp.float32).reshape(1, P)                    # (O, P)

    # constant 0/1 expansion matrices that build the lane-flattened pairwise diff on the MXU
    p_idx = np.arange(P)
    v_idx = np.arange(V)[:, None]
    e1 = jnp.asarray((p_idx[None, :] // V) == v_idx, jnp.float32)        # (V, P)
    e2 = jnp.asarray((p_idx[None, :] % V) == v_idx, jnp.float32)         # (V, P)

    nb = _pick_block_n(N) if block_n is None else block_n
    assert N % nb == 0, "block_n must divide the batch size"
    grid = (N // nb,)

    kernel = functools.partial(_ctrgc_kernel, nb=nb)

    flops = N * (2 * 2 * R * K * V + 2 * 2 * R * V * P + 2 * O * R * P)
    bytes_accessed = (N * (K * V + O * P) * 4
                      + (2 * R * K + 2 * V * P + O * R + O * P + R) * 4)
    cost = pl.CostEstimate(flops=flops, transcendentals=N * R * P,
                           bytes_accessed=bytes_accessed)

    grid_spec = pltpu.PrefetchScalarGridSpec(
        num_scalar_prefetch=0,
        grid=grid,
        in_specs=[
            pl.BlockSpec((nb, K, V), lambda n: (n, 0, 0)),   # x (native order)
            pl.BlockSpec((R, K), lambda n: (0, 0)),          # conv1 weight (mean fused)
            pl.BlockSpec((R, K), lambda n: (0, 0)),          # conv2 weight (mean fused)
            pl.BlockSpec((V, P), lambda n: (0, 0)),          # E1
            pl.BlockSpec((V, P), lambda n: (0, 0)),          # E2
            pl.BlockSpec((R, 1), lambda n: (0, 0)),          # b1 - b2
            pl.BlockSpec((O, R), lambda n: (0, 0)),          # alpha * conv4 weight
            pl.BlockSpec((O, P), lambda n: (0, 0)),          # alpha*b4 + A (epilogue)
        ],
        out_specs=pl.BlockSpec((nb, O, P), lambda n: (n, 0, 0)),
    )
    out_flat = pl.pallas_call(
        kernel,
        out_shape=jax.ShapeDtypeStruct((N, O, P), jnp.float32),
        grid_spec=grid_spec,
        compiler_params=pltpu.CompilerParams(dimension_semantics=("parallel",)),
        cost_estimate=cost,
    )(x_flat, w1_rep, w2_rep, e1, e2, db, w4_m, ab)
    return out_flat.reshape(N, O, V, V)


def init_ctrgc_params(key, in_channels, out_channels, rel_reduction=8):
    """Deterministic synthetic init matching CTRGC_1.__init__ shapes.
    conv weights: kaiming_normal(fan_out) -> std = sqrt(2 / out_ch); biases -> 0."""
    if in_channels in (3, 9):
        rel_channels = 8
    else:
        rel_channels = in_channels // rel_reduction
    k1, k2, k4 = jax.random.split(key, 3)
    w1 = jax.random.normal(k1, (rel_channels, in_channels), jnp.float32) * np.sqrt(2.0 / rel_channels)
    w2 = jax.random.normal(k2, (rel_channels, in_channels), jnp.float32) * np.sqrt(2.0 / rel_channels)
    w4 = jax.random.normal(k4, (out_channels, rel_channels), jnp.float32) * np.sqrt(2.0 / out_channels)
    return {
        "w1": w1, "b1": jnp.zeros((rel_channels,), jnp.float32),
        "w2": w2, "b2": jnp.zeros((rel_channels,), jnp.float32),
        "w4": w4, "b4": jnp.zeros((out_channels,), jnp.float32),
    }


def ctrgc_reference(x, params, A, alpha=1.0):
    """Pure-JAX reference with the exact PyTorch op ordering (conv -> mean)."""
    w1, b1 = params["w1"], params["b1"]
    w2, b2 = params["w2"], params["b2"]
    w4, b4 = params["w4"], params["b4"]
    y1 = jnp.einsum("rc,nctv->nrtv", w1, x) + b1[None, :, None, None]
    y2 = jnp.einsum("rc,nctv->nrtv", w2, x) + b2[None, :, None, None]
    m1 = y1.mean(axis=2)                                   # (N, R, V)  == .mean(-2)
    m2 = y2.mean(axis=2)                                   # (N, R, V)
    d = jnp.tanh(m1[..., :, None] - m2[..., None, :])      # (N, R, V, V)
    out = jnp.einsum("or,nrvw->novw", w4, d) + b4[None, :, None, None]
    return out * alpha + A[None, None, :, :]


if __name__ == "__main__":
    key = jax.random.PRNGKey(0)
    kx, ka, kp = jax.random.split(key, 3)

    N, C_in, C_out, T, V = 2, 16, 16, 8, 16          # rel_channels = 16 // 8 = 2
    x = jax.random.normal(kx, (N, C_in, T, V), jnp.float32)
    A = jax.random.normal(ka, (V, V), jnp.float32) * 0.1
    params = init_ctrgc_params(kp, C_in, C_out)

    out = ctrgc_forward(x, params, A, alpha=1.0)
    out = jax.block_until_ready(out)

    ref = ctrgc_reference(x, params, A, alpha=1.0)
    assert out.shape == (N, C_out, V, V)
    np.testing.assert_allclose(np.asarray(out), np.asarray(ref), atol=1e-4, rtol=1e-4)
    print("KERNEL_OK")
</pallas_src>

<mosaic_0001>
module attributes {stable_mosaic.version = 11 : i64} {
  func.func @_ctrgc_kernel(%arg0: i32, %arg1: memref<1x128x16xf32, #tpu.memory_space<vmem>>, %arg2: memref<2x128xf32, #tpu.memory_space<vmem>>, %arg3: memref<2x128xf32, #tpu.memory_space<vmem>>, %arg4: memref<16x256xf32, #tpu.memory_space<vmem>>, %arg5: memref<16x256xf32, #tpu.memory_space<vmem>>, %arg6: memref<2x1xf32, #tpu.memory_space<vmem>>, %arg7: memref<16x2xf32, #tpu.memory_space<vmem>>, %arg8: memref<16x256xf32, #tpu.memory_space<vmem>>, %arg9: memref<1x16x256xf32, #tpu.memory_space<vmem>>) attributes {dimension_semantics = [#tpu.dimension_semantics<parallel>], iteration_bounds = array<i64: 2>, scalar_prefetch = 0 : i64, scratch_operands = 0 : i64, tpu.core_type = #tpu.core_type<tc>, window_params = [{transform_indices = @transform_0, window_bounds = array<i64: 1, 128, 16>}, {pipeline_mode = #tpu.pipeline_mode<synchronous>, transform_indices = @transform_1, window_bounds = array<i64: 2, 128>}, {pipeline_mode = #tpu.pipeline_mode<synchronous>, transform_indices = @transform_2, window_bounds = array<i64: 2, 128>}, {pipeline_mode = #tpu.pipeline_mode<synchronous>, transform_indices = @transform_3, window_bounds = array<i64: 16, 256>}, {pipeline_mode = #tpu.pipeline_mode<synchronous>, transform_indices = @transform_4, window_bounds = array<i64: 16, 256>}, {pipeline_mode = #tpu.pipeline_mode<synchronous>, transform_indices = @transform_5, window_bounds = array<i64: 2, 1>}, {pipeline_mode = #tpu.pipeline_mode<synchronous>, transform_indices = @transform_6, window_bounds = array<i64: 16, 2>}, {pipeline_mode = #tpu.pipeline_mode<synchronous>, transform_indices = @transform_7, window_bounds = array<i64: 16, 256>}, {transform_indices = @transform_8, window_bounds = array<i64: 1, 16, 256>}]} {
    %c0 = arith.constant 0 : index
    %c0_0 = arith.constant 0 : index
    %0 = vector.load %arg2[%c0, %c0_0] : memref<2x128xf32, #tpu.memory_space<vmem>>, vector<2x128xf32>
    %c0_1 = arith.constant 0 : index
    %c0_2 = arith.constant 0 : index
    %1 = vector.load %arg3[%c0_1, %c0_2] : memref<2x128xf32, #tpu.memory_space<vmem>>, vector<2x128xf32>
    %c0_3 = arith.constant 0 : index
    %c0_4 = arith.constant 0 : index
    %2 = vector.load %arg4[%c0_3, %c0_4] : memref<16x256xf32, #tpu.memory_space<vmem>>, vector<16x256xf32>
    %c0_5 = arith.constant 0 : index
    %c0_6 = arith.constant 0 : index
    %3 = vector.load %arg5[%c0_5, %c0_6] : memref<16x256xf32, #tpu.memory_space<vmem>>, vector<16x256xf32>
    %c0_7 = arith.constant 0 : index
    %c0_8 = arith.constant 0 : index
    %4 = vector.load %arg6[%c0_7, %c0_8] : memref<2x1xf32, #tpu.memory_space<vmem>>, vector<2x1xf32>
    %c0_9 = arith.constant 0 : index
    %c0_10 = arith.constant 0 : index
    %5 = vector.load %arg7[%c0_9, %c0_10] : memref<16x2xf32, #tpu.memory_space<vmem>>, vector<16x2xf32>
    %c0_11 = arith.constant 0 : index
    %c0_12 = arith.constant 0 : index
    %6 = vector.load %arg8[%c0_11, %c0_12] : memref<16x256xf32, #tpu.memory_space<vmem>>, vector<16x256xf32>
    %c0_13 = arith.constant 0 : index
    %c0_14 = arith.constant 0 : index
    %c0_15 = arith.constant 0 : index
    %7 = vector.load %arg1[%c0_13, %c0_14, %c0_15] : memref<1x128x16xf32, #tpu.memory_space<vmem>>, vector<1x128x16xf32>
    %8 = vector.shape_cast %7 : vector<1x128x16xf32> to vector<128x16xf32>
    %cst = arith.constant dense<0.000000e+00> : vector<2x16xf32>
    %9 = tpu.matmul %0, %8, %cst {dimension_numbers = #tpu.dot_dimension_numbers<[1], [0], [0], [1], [0, 0, 1, 1], [], []>} : vector<2x128xf32>, vector<128x16xf32>, vector<2x16xf32> -> vector<2x16xf32>
    %cst_16 = arith.constant dense<0.000000e+00> : vector<2x16xf32>
    %10 = tpu.matmul %1, %8, %cst_16 {dimension_numbers = #tpu.dot_dimension_numbers<[1], [0], [0], [1], [0, 0, 1, 1], [], []>} : vector<2x128xf32>, vector<128x16xf32>, vector<2x16xf32> -> vector<2x16xf32>
    %cst_17 = arith.constant dense<0.000000e+00> : vector<2x256xf32>
    %11 = tpu.matmul %9, %2, %cst_17 {dimension_numbers = #tpu.dot_dimension_numbers<[1], [0], [0], [1], [0, 0, 1, 1], [], []>} : vector<2x16xf32>, vector<16x256xf32>, vector<2x256xf32> -> vector<2x256xf32>
    %cst_18 = arith.constant dense<0.000000e+00> : vector<2x256xf32>
    %12 = tpu.matmul %10, %3, %cst_18 {dimension_numbers = #tpu.dot_dimension_numbers<[1], [0], [0], [1], [0, 0, 1, 1], [], []>} : vector<2x16xf32>, vector<16x256xf32>, vector<2x256xf32> -> vector<2x256xf32>
    %13 = arith.subf %11, %12 : vector<2x256xf32>
    %14 = vector.broadcast %4 : vector<2x1xf32> to vector<2x256xf32>
    %15 = arith.addf %13, %14 : vector<2x256xf32>
    %16 = math.tanh %15 : vector<2x256xf32>
    %cst_19 = arith.constant dense<0.000000e+00> : vector<16x256xf32>
    %17 = tpu.matmul %5, %16, %cst_19 {dimension_numbers = #tpu.dot_dimension_numbers<[1], [0], [0], [1], [0, 0, 1, 1], [], []>} : vector<16x2xf32>, vector<2x256xf32>, vector<16x256xf32> -> vector<16x256xf32>
    %18 = arith.addf %17, %6 : vector<16x256xf32>
    %c0_20 = arith.constant 0 : index
    %c0_21 = arith.constant 0 : index
    %c0_22 = arith.constant 0 : index
    %19 = vector.load %arg9[%c0_20, %c0_21, %c0_22] : memref<1x16x256xf32, #tpu.memory_space<vmem>>, vector<1x16x256xf32>
    %20 = vector.shape_cast %19 : vector<1x16x256xf32> to vector<16x256xf32>
    %21 = vector.shape_cast %18 : vector<16x256xf32> to vector<1x16x256xf32>
    tpu.vector_store %arg9[%c0_20, %c0_21, %c0_22], %21 {strides = array<i32>} : memref<1x16x256xf32, #tpu.memory_space<vmem>>, vector<1x16x256xf32>,
    return
  }
  func.func @transform_0(%arg0: i32) -> (i32, i32, i32) {
    %c0_i32 = arith.constant 0 : i32
    %c0_i32_0 = arith.constant 0 : i32
    %c0_i32_1 = arith.constant 0 : i32
    return %arg0, %c0_i32, %c0_i32_0 : i32, i32, i32
  }
  func.func @transform_1(%arg0: i32) -> (i32, i32) {
    %c0_i32 = arith.constant 0 : i32
    %c0_i32_0 = arith.constant 0 : i32
    %c0_i32_1 = arith.constant 0 : i32
    return %c0_i32, %c0_i32_0 : i32, i32
  }
  func.func @transform_2(%arg0: i32) -> (i32, i32) {
    %c0_i32 = arith.constant 0 : i32
    %c0_i32_0 = arith.constant 0 : i32
    %c0_i32_1 = arith.constant 0 : i32
    return %c0_i32, %c0_i32_0 : i32, i32
  }
  func.func @transform_3(%arg0: i32) -> (i32, i32) {
    %c0_i32 = arith.constant 0 : i32
    %c0_i32_0 = arith.constant 0 : i32
    %c0_i32_1 = arith.constant 0 : i32
    return %c0_i32, %c0_i32_0 : i32, i32
  }
  func.func @transform_4(%arg0: i32) -> (i32, i32) {
    %c0_i32 = arith.constant 0 : i32
    %c0_i32_0 = arith.constant 0 : i32
    %c0_i32_1 = arith.constant 0 : i32
    return %c0_i32, %c0_i32_0 : i32, i32
  }
  func.func @transform_5(%arg0: i32) -> (i32, i32) {
    %c0_i32 = arith.constant 0 : i32
    %c0_i32_0 = arith.constant 0 : i32
    %c0_i32_1 = arith.constant 0 : i32
    return %c0_i32, %c0_i32_0 : i32, i32
  }
  func.func @transform_6(%arg0: i32) -> (i32, i32) {
    %c0_i32 = arith.constant 0 : i32
    %c0_i32_0 = arith.constant 0 : i32
    %c0_i32_1 = arith.constant 0 : i32
    return %c0_i32, %c0_i32_0 : i32, i32
  }
  func.func @transform_7(%arg0: i32) -> (i32, i32) {
    %c0_i32 = arith.constant 0 : i32
    %c0_i32_0 = arith.constant 0 : i32
    %c0_i32_1 = arith.constant 0 : i32
    return %c0_i32, %c0_i32_0 : i32, i32
  }
  func.func @transform_8(%arg0: i32) -> (i32, i32, i32) {
    %c0_i32 = arith.constant 0 : i32
    %c0_i32_0 = arith.constant 0 : i32
    %c0_i32_1 = arith.constant 0 : i32
    return %arg0, %c0_i32, %c0_i32_0 : i32, i32, i32
  }
}

</mosaic_0001>

<bundles_post_ra>
// kernel: tpu_custom_call.1
= control target key start
LH: loop header
LB: loop body
LE: loop exit
PB: predicated region body
PF: predicated region fallthrough
CT: control target
= control target key end

     0   :  { %13 = vsyncpa [#allocation3], 0  ;;  %s954_s0 = inlined_call_operand.vmem [shape: f32[2,128,16], index: 0, kind: input, shape index: {}]   ;;  %s955_s1 = inlined_call_operand.vmem [shape: f32[2,128], index: 1, kind: input, shape index: {}]   ;;  %s956_s2 = inlined_call_operand.vmem [shape: f32[2,128], index: 2, kind: input, shape index: {}]   ;;  %s957_s3 = inlined_call_operand.vmem [shape: f32[16,256], index: 3, kind: input, shape index: {}]   ;;  %s958_s4 = inlined_call_operand.vmem [shape: f32[16,256], index: 4, kind: input, shape index: {}]   ;;  %s959_s5 = inlined_call_operand.vmem [shape: f32[2,1], index: 5, kind: input, shape index: {}]   ;;  %s960_s6 = inlined_call_operand.vmem [shape: f32[16,2], index: 6, kind: input, shape index: {}]   ;;  %s961_s7 = inlined_call_operand.vmem [shape: f32[16,256], index: 7, kind: input, shape index: {}]   ;;  %s962_s8 = inlined_call_operand.hbm [shape: f32[2,16,256], index: 8, kind: output, shape index: {}]  }
   0x1   :  { %15 = vsyncpa [#allocation3 + $0x1], 0  ;;  %s800_s27 = smov 0   ;;  %s802_s28 = smov 0  }
   0x2   :  { %s804_s29 = smov 0   ;;  %s806_s30 = smov 0  }
   0x3 LB: > { %s821_s9 = sadd.s32 4294967295, %s750_s30   ;;  %s617_s10 = sadd.s32 4294967294, %s750_s30   ;;  %s750_s30 = sphi %s806_s30, %s968_s30   ;;  %s746_s29 = sphi %s804_s29, %s967_s29   ;;  %s742_s28 = sphi %s802_s28, %s966_s28   ;;  %s738_s27 = sphi %s800_s27, %s965_s27  }
   0x4   : > { %s825_s11 = sadd.s32 1, %s750_s30   ;;  %s201_s12 = sadd.s32 1, %s746_s29 }
   0x5   : > { %s198_s13 = ssub.s32 %s750_s30, %s825_s11  ;;  %p211_p0 = scmp.ne.s32.totalorder %s746_s29, %s742_s28 }
   0x6   : > { %p199_p1 = scmp.eq.s32.totalorder %s198_s13, 0  ;;  %p212_p2 = scmp.eq.s32.totalorder %s821_s9, 1 }
   0x7   : > { %p217_p3 = scmp.ne.s32.totalorder %s742_s28, %s738_s27  ;;  %p218_p4 = scmp.eq.s32.totalorder %s617_s10, 1 }
   0x8   : > { %s836_s14 = scalar_select %p199_p1, %s746_s29, %s201_s12  }
   0x9   : > { %p838_p5 = por %p212_p2, %p211_p0  ;;  %p842_p6 = por %p218_p4, %p217_p3 }
   0xa   : > { %p620_p7 = scmp.ge.s32.totalorder %s750_s30, 1  ;;  %p265_p8 = scmp.lt.s32.totalorder %s750_s30, 3 }
   0xc   : > { %p266_p9 = pnand %p620_p7, %p265_p8 }
   0xd   : > { %p299_p10 = scmp.lt.s32.totalorder (!%p266_p9), %s821_s9, 1  ;;  %s296_s22 = sand.u32 (!%p266_p9), 1, %s742_s28  }
   0xe   : > { %269 = sbr.rel (%p266_p9) target bundleno = 480 (0x1e0), region = 52  ;;  %s621_s23 = sshll.u32 (!%p266_p9), %s296_s22, 5 }
   0xf   : > { %s640_s12 = sshll.u32 (!%p266_p9), %s821_s9, 5  ;;  %s298_s13 = scalar_lea.vmem (!%p266_p9), [#allocation2], %s621_s23 }
  0x10   : > { %s551_s19 = scalar_lea.hbm (!%p266_p9), %s962_s8, %s640_s12  ;;  %s552_s20 = sshll.u32 (!%p266_p9), %s298_s13, 4  ;;  %s553_s20 = int_to_ptr.vmem [resolvable:$true] %s552_s20 }
  0x11   : > { %s554_s25 = sshll.u32 (!%p266_p9), %s551_s19, 4  ;;  %s708_s19 = scalar_lea.hbm (!%p266_p9), %s962_s8, 64  ;;  %s555_s25 = int_to_ptr.hbm [resolvable:$true] %s554_s25 }
  0x12   : > { %s702_s23 = sshra.s32 (!%p266_p9), %s555_s25, 4  ;;  %s703_s23 = int_to_ptr.hbm [resolvable:$true] %s702_s23 }
  0x13   : > { %s300_s17 = scalar_select %p299_p10, %s821_s9, 1  ;;  %v308_v4 = vld [vmem:[%s957_s3 + $0x10] sm:$0xff]  ;;  %v309_v6 = vld [vmem:[%s957_s3 + $0x18] sm:$0xff]  ;;  %v304_v18 = vld [vmem:[%s955_s1] sm:$0x3]  ;;  %v752_v27 = vmov 0  }
  0x14   : > { %395 = vmatpush.msra.mxu2 %v308_v4  ;;  %415 = vmatpush.msra.mxu3 %v309_v6  ;;  %v305_v19 = vld [vmem:[%s956_s2] sm:$0x3]  ;;  %v307_v21 = vld [vmem:[%s957_s3 + $0x8] sm:$0xff]  ;;  %v312_v22 = vld [vmem:[%s958_s4 + $0x10] sm:$0xff]  ;;  %vm377_vm0 = vcmask 130048   ;;  %vm482_vm1 = vcmask 1041408   ;;  %p709_p0 = scmp.lt.s32.totalorder %s703_s23, %s962_s8 }
  0x15   : > { %s639_s18 = sshll.u32 %s300_s17, 7  ;;  %v306_v20 = vld [vmem:[%s957_s3] sm:$0xff]  ;;  %v313_v23 = vld [vmem:[%s958_s4 + $0x18] sm:$0xff]  ;;  %v311_v25 = vld [vmem:[%s958_s4 + $0x8] sm:$0xff]  ;;  %683 = vset.pattern.permute.xlu0 %v752_v27  ;;  %vm475_vm2 = vcmask 15360   ;;  %s540_s9 = scalar_lea.sflag [#allocation3], %s296_s22 }
  0x16   : > { %s853_s21 = scalar_lea.vmem %s954_s0, %s639_s18  ;;  %396 = vmatpush.msra.mxu2 %v306_v20  ;;  %416 = vmatpush.msra.mxu3 %v307_v21  ;;  %v310_v24 = vld [vmem:[%s958_s4] sm:$0xff]  ;;  %v316_v42 = vld [vmem:[%s960_s6 + $0x8] sm:$0xff]  ;;  %v319_v49 = vld [vmem:[%s961_s7 + $0x10] sm:$0xff]  ;;  %s704_s12 = scalar_lea.hbm %s703_s23, 32 }
  0x17   : > { %v336_v0 = vld [vmem:[%s853_s21 + $0x78] sm:$0xff]  ;;  %v335_v1 = vld [vmem:[%s853_s21 + $0x70] sm:$0xff]  ;;  %v334_v2 = vld [vmem:[%s853_s21 + $0x68] sm:$0xff]  ;;  %p705_p11 = scmp.ne.s32.totalorder %s703_s23, %s704_s12  ;;  %p710_p1 = scmp.lt.s32.totalorder %s708_s19, %s704_s12 }
  0x18   : > { %337 = vmatpush.msra.mxu0 %v336_v0  ;;  %357 = vmatpush.msra.mxu1 %v336_v0  ;;  %v333_v3 = vld [vmem:[%s853_s21 + $0x60] sm:$0xff]  ;;  %v332_v5 = vld [vmem:[%s853_s21 + $0x58] sm:$0xff]  ;;  %v331_v7 = vld [vmem:[%s853_s21 + $0x50] sm:$0xff] }
  0x19   : > { %v330_v8 = vld [vmem:[%s853_s21 + $0x48] sm:$0xff]  ;;  %v329_v9 = vld [vmem:[%s853_s21 + $0x40] sm:$0xff]  ;;  %v328_v10 = vld [vmem:[%s853_s21 + $0x38] sm:$0xff]  ;;  %438 = vmatpush.msrb.mxu2 %v312_v22  ;;  %458 = vmatpush.msrb.mxu3 %v313_v23  ;;  %p706_p12 = pnand %p705_p11, %p838_p5  ;;  %p711_p2 = por %p710_p1, %p709_p0 }
  0x1a   : > { %338 = vmatpush.msra.mxu0 %v335_v1  ;;  %358 = vmatpush.msra.mxu1 %v335_v1  ;;  %v327_v11 = vld [vmem:[%s853_s21 + $0x30] sm:$0xff]  ;;  %v326_v12 = vld [vmem:[%s853_s21 + $0x28] sm:$0xff]  ;;  %v325_v13 = vld [vmem:[%s853_s21 + $0x20] sm:$0xff] }
  0x1b   : > { %v324_v14 = vld [vmem:[%s853_s21 + $0x18] sm:$0xff]  ;;  %v323_v15 = vld [vmem:[%s853_s21 + $0x10] sm:$0xff]  ;;  %v322_v16 = vld [vmem:[%s853_s21 + $0x8] sm:$0xff]  ;;  %439 = vmatpush.msrb.mxu2 %v310_v24  ;;  %459 = vmatpush.msrb.mxu3 %v311_v25  ;;  %p707_p13 = pneg %p706_p12 }
  0x1c   : > { %339 = vmatpush.msra.mxu0 %v334_v2  ;;  %359 = vmatpush.msra.mxu1 %v334_v2  ;;  %v321_v17 = vld [vmem:[%s853_s21] sm:$0xff]  ;;  %v318_v44 = vld [vmem:[%s961_s7 + $0x8] sm:$0xff]  ;;  %v320_v50 = vld [vmem:[%s961_s7 + $0x18] sm:$0xff] }
  0x1d   : > { %v314_v26 = vld [vmem:[%s959_s5] sm:$0x3]  ;;  %p712_p3 = pnand %p711_p2, %p707_p13 }
  0x1e   : > { %340 = vmatpush.msra.mxu0 %v333_v3  ;;  %360 = vmatpush.msra.mxu1 %v333_v3  ;;  %v315_v39 = vld [vmem:[%s960_s6] sm:$0xff] }
  0x1f   : > { %468 = vperm.xlu0 %683, %v314_v26   ;;  %v317_v43 = vld [vmem:[%s961_s7] sm:$0xff] }
  0x20   : > { %341 = vmatpush.msra.mxu0 %v332_v5  ;;  %361 = vmatpush.msra.mxu1 %v332_v5 }
  0x22   : > { %342 = vmatpush.msra.mxu0 %v331_v7  ;;  %362 = vmatpush.msra.mxu1 %v331_v7 }
  0x24   : > { %343 = vmatpush.msra.mxu0 %v330_v8  ;;  %363 = vmatpush.msra.mxu1 %v330_v8 }
  0x26   : > { %344 = vmatpush.msra.mxu0 %v329_v9  ;;  %364 = vmatpush.msra.mxu1 %v329_v9 }
  0x28   : > { %345 = vmatpush.msra.mxu0 %v328_v10  ;;  %365 = vmatpush.msra.mxu1 %v328_v10 }
  0x2a   : > { %346 = vmatpush.msra.mxu0 %v327_v11  ;;  %366 = vmatpush.msra.mxu1 %v327_v11 }
  0x2c   : > { %347 = vmatpush.msra.mxu0 %v326_v12  ;;  %367 = vmatpush.msra.mxu1 %v326_v12 }
  0x2e   : > { %348 = vmatpush.msra.mxu0 %v325_v13  ;;  %368 = vmatpush.msra.mxu1 %v325_v13 }
  0x30   : > { %349 = vmatpush.msra.mxu0 %v324_v14  ;;  %369 = vmatpush.msra.mxu1 %v324_v14 }
  0x32   : > { %350 = vmatpush.msra.mxu0 %v323_v15  ;;  %370 = vmatpush.msra.mxu1 %v323_v15 }
  0x34   : > { %351 = vmatpush.msra.mxu0 %v322_v16  ;;  %371 = vmatpush.msra.mxu1 %v322_v16 }
  0x36   : > { %352 = vmatpush.msra.mxu0 %v321_v17  ;;  %372 = vmatpush.msra.mxu1 %v321_v17 }
  0x37   : > { %353 = vmatmul.f32.vlgmr.msra.gmra.mxu0 %v304_v18  ;;  %373 = vmatmul.f32.vlgmr.msra.gmra.mxu1 %v305_v19 }
  0x91   : > { %v469_v32 = vpop.permute.xlu0 %468 }
  0xb4   : > { %v354_v28 = vpop.f32.mrf.mxu0  ;;  %v374_v29 = vpop.f32.mrf.mxu1 }
  0xb5   : > { %624 = vmatmul.msk.f32.vlgmr.msra.gmra.mxu2 %vm377_vm0, %v354_v28  ;;  %625 = vmatmul.msk.f32.vlgmr.msra.gmra.mxu3 %vm377_vm0, %v354_v28 }
  0xbd   : > { %626 = vmatmul.msk.f32.vlgmr.msrb.gmra.mxu2 %vm377_vm0, %v374_v29  ;;  %627 = vmatmul.msk.f32.vlgmr.msrb.gmra.mxu3 %vm377_vm0, %v374_v29 }
 0x138   : > { %v398_v30 = vpop.f32.mrf.mxu2  ;;  %v418_v31 = vpop.f32.mrf.mxu3 }
 0x140   : > { %v441_v33 = vpop.f32.mrf.mxu2  ;;  %v461_v34 = vpop.f32.mrf.mxu3 }
 0x141   : > { %v464_v35 = vsub.f32 %v398_v30, %v441_v33  ;;  %v465_v36 = vsub.f32 %v418_v31, %v461_v34 }
 0x143   : > { %v471_v37 = vadd.f32 %v469_v32, %v464_v35  ;;  %v472_v38 = vadd.f32 %v469_v32, %v465_v36 }
 0x145   : > { %684 = vtanh.f32 %v471_v37 }
 0x146   : > { %686 = vtanh.f32 %v472_v38 }
 0x14b   : > { %v685_v40 = vpop.eup %684 }
 0x14c   : > { %v687_v41 = vpop.eup %686  ;;  %628 = vmatpush.msk.msra.mxu2 %vm482_vm1, %v685_v40 }
 0x14d   : > { %631 = vmatpush.msk.msra.mxu3 %vm482_vm1, %v687_v41  ;;  %629 = vmatmul.msk.f32.vlgmr.msra.gmra.mxu2 %vm475_vm2, %v315_v39 }
 0x14e   : > { %632 = vmatmul.msk.f32.vlgmr.msra.gmra.mxu3 %vm475_vm2, %v315_v39 }
 0x155   : > { %630 = vmatmul.msk.f32.gmra.mxu2 %vm475_vm2, %v316_v42 }
 0x156   : > { %633 = vmatmul.msk.f32.gmra.mxu3 %vm475_vm2, %v316_v42 }
 0x1d0   : > { %v506_v45 = vpop.f32.mrf.mxu2 }
 0x1d1   : > { %v507_v46 = vadd.f32 %v506_v45, %v317_v43  ;;  %v529_v47 = vpop.f32.mrf.mxu3 }
 0x1d2   : > { %v530_v48 = vadd.f32 %v529_v47, %v318_v44 }
 0x1d3   : > { %535 = vst [vmem:[%s298_s13] sm:$0xff] %v507_v46 }
 0x1d4   : > { %536 = vst [vmem:[%s298_s13 + $0x8] sm:$0xff] %v530_v48 }
 0x1d8   : > { %v509_v51 = vpop.f32.mrf.mxu2 }
 0x1d9   : > { %v510_v52 = vadd.f32 %v509_v51, %v319_v49  ;;  %v532_v53 = vpop.f32.mrf.mxu3 }
 0x1da   : > { %v533_v54 = vadd.f32 %v532_v53, %v320_v50 }
 0x1db   : > { %537 = vst [vmem:[%s298_s13 + $0x10] sm:$0xff] %v510_v52 }
 0x1dc   : > { %538 = vst [vmem:[%s298_s13 + $0x18] sm:$0xff] %v533_v54 }
 0x1dd   : > { %715 = shalt.err (!%p712_p3)
}
 0x1de   : > { %s753_s22 = smov 256   ;;  %s754_s13 = smov 16  }
 0x1df   : > { %641 = dma.vmem_to_hbm [thread:$0]  (%p838_p5), %s553_s20, 512, %s555_s25, %s540_s9, %s753_s22, %s753_s22, %s754_s13  }
 0x1e0 PF: > { %p647_p4 = scmp.ge.s32.totalorder %s750_s30, 2  ;;  %s569_s26 = sand.u32 1, %s738_s27  }
 0x1e1   : > { %s570_s10 = scalar_lea.sflag [#allocation3], %s569_s26 }
 0x1e2   : > { %p644_p7 = pnand %p647_p4, %p842_p6 }
 0x1e4   : > { %p645_p8 = pneg %p644_p7 }
 0x1e6   : > { %733 = dma.done.wait (%p645_p8), %s570_s10, 512  }
 0x1e7   : > { %735 = vsyncadd (%p645_p8), %s570_s10, 4294966784  ;;  %p18_p9 = scmp.ge.s32.totalorder %s825_s11, 4   ;;  %s965_s27 = smov %s742_s28 }
 0x1e8   : > { %s966_s28 = smov %s746_s29  ;;  %s967_s29 = smov %s836_s14 }
 0x1e9   : > { %s968_s30 = smov %s825_s11  ;;  %20 = sbr.rel (!%p18_p9) target bundleno = 3 (0x3), region = 87 }
 0x1ee   :  { %576 = vsyncpa [#allocation3], 1 }
 0x1ef   :  { %578 = vsyncpa [#allocation3 + $0x1], 1 }

</bundles_post_ra>
